<compile_context>
chip_gen: v7x
topology: tpu7x:2x2x1
jax: 0.10.0
libtpu: 0.0.40
codegen_flags: <defaults>
</compile_context>

<pallas_src>
import jax
import jax.numpy as jnp
from jax.experimental import pallas as pl
from jax.experimental.pallas import tpu as pltpu

LANE = 128     # TPU lane width (last dim of a VMEM tile)
SUBLANE = 8    # f32 sublane granularity (second-to-last dim)


def _round_up(n, m):
    return ((n + m - 1) // m) * m


def residual_ffn_kernel(x_ref, w1_ref, b1_ref, w2_ref, b2_ref, o_ref):
    """o = (GELU(x @ w1 + b1) @ w2 + b2) + x  on one token tile."""
    x = x_ref[...]                                        # (tn, D)  f32
    # bf16 operands feed the MXU at full rate on v5e/v6e/v7x; f32 accumulate.
    h = jnp.dot(x.astype(jnp.bfloat16), w1_ref[...],
                preferred_element_type=jnp.float32)       # (tn, Hp) f32
    h = jax.nn.gelu(h + b1_ref[...])                      # f32 (VPU/EUP)
    y = jnp.dot(h.astype(jnp.bfloat16), w2_ref[...],
                preferred_element_type=jnp.float32)       # (tn, D)  f32
    # Residual add in f32; single (no-op for f32 I/O) cast at the store.
    o_ref[...] = (y + b2_ref[...] + x).astype(o_ref.dtype)


def residual_add_ffn(x, w1, b1, w2, b2, *, token_tile=512):
    """x: (N, D) f32. Returns fn(x) + x with fn = Linear -> GELU -> Linear.

    Only the weights/biases are padded (H -> multiple of 128); x and the
    output are streamed at their natural shape, with the ragged last token
    tile handled by Pallas' masked boundary writes.
    """
    N, D = x.shape
    H = w1.shape[1]
    Hp = _round_up(H, LANE)

    # One-time, tiny padding of the resident operands only. Zero padding is
    # exact: GELU(0 + 0) = 0 and the padded w2 rows are zero.
    w1_p = jnp.pad(w1, ((0, 0), (0, Hp - H))).astype(jnp.bfloat16)
    b1_p = jnp.pad(b1, ((0, 0), (0, Hp - H)))
    w2_p = jnp.pad(w2, ((0, Hp - H), (0, 0))).astype(jnp.bfloat16)
    b2_p = b2

    # Token tile: big enough to amortize the ~0.35 us/step grid overhead, but
    # split into >= 2 steps whenever N allows so v7x's two TensorCores can
    # both be used via the "parallel" axis. Multiple of the sublane width.
    tn = min(token_tile, _round_up(pl.cdiv(N, 2), SUBLANE))
    tn = max(SUBLANE, tn)
    grid = (pl.cdiv(N, tn),)   # ragged last tile: Pallas masks the OOB writes

    # Constant-index (resident) operands: single-buffered, never re-fetched.
    resident = dict(pipeline_mode=pl.Buffered(1))

    out = pl.pallas_call(
        residual_ffn_kernel,
        out_shape=jax.ShapeDtypeStruct((N, D), x.dtype),
        grid_spec=pltpu.PrefetchScalarGridSpec(
            num_scalar_prefetch=0,
            grid=grid,
            in_specs=[
                pl.BlockSpec((tn, D), lambda i: (i, 0)),              # x tile
                pl.BlockSpec((D, Hp), lambda i: (0, 0), **resident),  # w1
                pl.BlockSpec((1, Hp), lambda i: (0, 0), **resident),  # b1
                pl.BlockSpec((Hp, D), lambda i: (0, 0), **resident),  # w2
                pl.BlockSpec((1, D), lambda i: (0, 0), **resident),   # b2
            ],
            out_specs=pl.BlockSpec((tn, D), lambda i: (i, 0)),
        ),
        compiler_params=pltpu.CompilerParams(
            dimension_semantics=("parallel",),
            vmem_limit_bytes=32 * 1024 * 1024,
        ),
    )(x, w1_p, b1_p, w2_p, b2_p)
    return out


if __name__ == "__main__":
    # Small shapes implied by the conformer usage: batch=2, seq=8, emb=32, hidden=64.
    batch, seq, emb, hidden = 2, 8, 32, 64

    key = jax.random.PRNGKey(0)
    kx, kw1, kb1, kw2, kb2 = jax.random.split(key, 5)

    x = jax.random.normal(kx, (batch, seq, emb), dtype=jnp.float32)

    # Deterministic synthetic parameters (not a checkpoint load).
    w1 = jax.random.normal(kw1, (emb, hidden), dtype=jnp.float32) * 0.05
    b1 = jax.random.normal(kb1, (1, hidden), dtype=jnp.float32) * 0.01
    w2 = jax.random.normal(kw2, (hidden, emb), dtype=jnp.float32) * 0.05
    b2 = jax.random.normal(kb2, (1, emb), dtype=jnp.float32) * 0.01

    # Flatten (batch, seq, emb) -> (tokens, emb); glue reshapes stay in JAX.
    x2d = x.reshape(batch * seq, emb)

    out2d = residual_add_ffn(x2d, w1, b1, w2, b2)
    out = out2d.reshape(batch, seq, emb)
    jax.block_until_ready(out)

    # Pure-JAX f32 reference for the same semantics: fn(x) + x.
    ref = (jnp.dot(jax.nn.gelu(jnp.dot(x2d, w1) + b1), w2) + b2 + x2d
           ).reshape(batch, seq, emb)
    # Tolerance accounts for the intentional bf16 MXU operands in the kernel.
    assert jnp.allclose(out, ref, atol=1e-2, rtol=1e-2), "mismatch vs reference"

    print("KERNEL_OK")
</pallas_src>

<mosaic_0001>
module attributes {stable_mosaic.version = 11 : i64} {
  func.func @residual_ffn_kernel(%arg0: i32, %arg1: memref<8x32xf32, #tpu.memory_space<vmem>>, %arg2: memref<32x128xbf16, #tpu.memory_space<vmem>>, %arg3: memref<1x128xf32, #tpu.memory_space<vmem>>, %arg4: memref<128x32xbf16, #tpu.memory_space<vmem>>, %arg5: memref<1x32xf32, #tpu.memory_space<vmem>>, %arg6: memref<8x32xf32, #tpu.memory_space<vmem>>) attributes {dimension_semantics = [#tpu.dimension_semantics<parallel>], iteration_bounds = array<i64: 2>, scalar_prefetch = 0 : i64, scratch_operands = 0 : i64, tpu.core_type = #tpu.core_type<tc>, window_params = [{transform_indices = @transform_0, window_bounds = array<i64: 8, 32>}, {pipeline_mode = #tpu.pipeline_mode<synchronous>, transform_indices = @transform_1, window_bounds = array<i64: 32, 128>}, {pipeline_mode = #tpu.pipeline_mode<synchronous>, transform_indices = @transform_2, window_bounds = array<i64: 1, 128>}, {pipeline_mode = #tpu.pipeline_mode<synchronous>, transform_indices = @transform_3, window_bounds = array<i64: 128, 32>}, {pipeline_mode = #tpu.pipeline_mode<synchronous>, transform_indices = @transform_4, window_bounds = array<i64: 1, 32>}, {transform_indices = @transform_5, window_bounds = array<i64: 8, 32>}]} {
    %c0 = arith.constant 0 : index
    %c0_0 = arith.constant 0 : index
    %0 = vector.load %arg1[%c0, %c0_0] : memref<8x32xf32, #tpu.memory_space<vmem>>, vector<8x32xf32>
    %1 = arith.truncf %0 : vector<8x32xf32> to vector<8x32xbf16>
    %c0_1 = arith.constant 0 : index
    %c0_2 = arith.constant 0 : index
    %2 = vector.load %arg2[%c0_1, %c0_2] : memref<32x128xbf16, #tpu.memory_space<vmem>>, vector<32x128xbf16>
    %cst = arith.constant dense<0.000000e+00> : vector<8x128xf32>
    %3 = tpu.matmul %1, %2, %cst {dimension_numbers = #tpu.dot_dimension_numbers<[1], [0], [0], [1], [0, 0, 1, 1], [], []>} : vector<8x32xbf16>, vector<32x128xbf16>, vector<8x128xf32> -> vector<8x128xf32>
    %c0_3 = arith.constant 0 : index
    %c0_4 = arith.constant 0 : index
    %4 = vector.load %arg3[%c0_3, %c0_4] : memref<1x128xf32, #tpu.memory_space<vmem>>, vector<1x128xf32>
    %5 = vector.broadcast %4 : vector<1x128xf32> to vector<8x128xf32>
    %6 = arith.addf %3, %5 : vector<8x128xf32>
    %7 = arith.mulf %6, %6 : vector<8x128xf32>
    %8 = arith.mulf %6, %7 : vector<8x128xf32>
    %cst_5 = arith.constant 4.471500e-02 : f32
    %9 = vector.broadcast %cst_5 : f32 to vector<8x128xf32>
    %10 = arith.mulf %9, %8 : vector<8x128xf32>
    %11 = arith.addf %6, %10 : vector<8x128xf32>
    %cst_6 = arith.constant 0.797884583 : f32
    %12 = vector.broadcast %cst_6 : f32 to vector<8x128xf32>
    %13 = arith.mulf %12, %11 : vector<8x128xf32>
    %14 = math.tanh %13 : vector<8x128xf32>
    %cst_7 = arith.constant 1.000000e+00 : f32
    %15 = vector.broadcast %cst_7 : f32 to vector<8x128xf32>
    %16 = arith.addf %15, %14 : vector<8x128xf32>
    %cst_8 = arith.constant 5.000000e-01 : f32
    %17 = vector.broadcast %cst_8 : f32 to vector<8x128xf32>
    %18 = arith.mulf %17, %16 : vector<8x128xf32>
    %19 = arith.mulf %6, %18 : vector<8x128xf32>
    %20 = arith.truncf %19 : vector<8x128xf32> to vector<8x128xbf16>
    %c0_9 = arith.constant 0 : index
    %c0_10 = arith.constant 0 : index
    %21 = vector.load %arg4[%c0_9, %c0_10] : memref<128x32xbf16, #tpu.memory_space<vmem>>, vector<128x32xbf16>
    %cst_11 = arith.constant dense<0.000000e+00> : vector<8x32xf32>
    %22 = tpu.matmul %20, %21, %cst_11 {dimension_numbers = #tpu.dot_dimension_numbers<[1], [0], [0], [1], [0, 0, 1, 1], [], []>} : vector<8x128xbf16>, vector<128x32xbf16>, vector<8x32xf32> -> vector<8x32xf32>
    %c0_12 = arith.constant 0 : index
    %c0_13 = arith.constant 0 : index
    %23 = vector.load %arg5[%c0_12, %c0_13] : memref<1x32xf32, #tpu.memory_space<vmem>>, vector<1x32xf32>
    %24 = vector.broadcast %23 : vector<1x32xf32> to vector<8x32xf32>
    %25 = arith.addf %22, %24 : vector<8x32xf32>
    %26 = arith.addf %25, %0 : vector<8x32xf32>
    %c0_14 = arith.constant 0 : index
    %c0_15 = arith.constant 0 : index
    %27 = vector.load %arg6[%c0_14, %c0_15] : memref<8x32xf32, #tpu.memory_space<vmem>>, vector<8x32xf32>
    tpu.vector_store %arg6[%c0_14, %c0_15], %26 {strides = array<i32>} : memref<8x32xf32, #tpu.memory_space<vmem>>, vector<8x32xf32>,
    return
  }
  func.func @transform_0(%arg0: i32) -> (i32, i32) {
    %c0_i32 = arith.constant 0 : i32
    %c0_i32_0 = arith.constant 0 : i32
    return %arg0, %c0_i32 : i32, i32
  }
  func.func @transform_1(%arg0: i32) -> (i32, i32) {
    %c0_i32 = arith.constant 0 : i32
    %c0_i32_0 = arith.constant 0 : i32
    %c0_i32_1 = arith.constant 0 : i32
    return %c0_i32, %c0_i32_0 : i32, i32
  }
  func.func @transform_2(%arg0: i32) -> (i32, i32) {
    %c0_i32 = arith.constant 0 : i32
    %c0_i32_0 = arith.constant 0 : i32
    %c0_i32_1 = arith.constant 0 : i32
    return %c0_i32, %c0_i32_0 : i32, i32
  }
  func.func @transform_3(%arg0: i32) -> (i32, i32) {
    %c0_i32 = arith.constant 0 : i32
    %c0_i32_0 = arith.constant 0 : i32
    %c0_i32_1 = arith.constant 0 : i32
    return %c0_i32, %c0_i32_0 : i32, i32
  }
  func.func @transform_4(%arg0: i32) -> (i32, i32) {
    %c0_i32 = arith.constant 0 : i32
    %c0_i32_0 = arith.constant 0 : i32
    %c0_i32_1 = arith.constant 0 : i32
    return %c0_i32, %c0_i32_0 : i32, i32
  }
  func.func @transform_5(%arg0: i32) -> (i32, i32) {
    %c0_i32 = arith.constant 0 : i32
    %c0_i32_0 = arith.constant 0 : i32
    return %arg0, %c0_i32 : i32, i32
  }
}

</mosaic_0001>

<bundles_post_ra>
// kernel: tpu_custom_call.1
= control target key start
LH: loop header
LB: loop body
LE: loop exit
PB: predicated region body
PF: predicated region fallthrough
CT: control target
= control target key end

     0   :  { %10 = vsyncpa [#allocation3], 0  ;;  %s837_s0 = inlined_call_operand.vmem [shape: f32[16,32], index: 0, kind: input, shape index: {}]   ;;  %s838_s1 = inlined_call_operand.vmem [shape: bf16[32,128], index: 1, kind: input, shape index: {}]   ;;  %s839_s2 = inlined_call_operand.vmem [shape: f32[1,128], index: 2, kind: input, shape index: {}]   ;;  %s840_s3 = inlined_call_operand.vmem [shape: bf16[128,32], index: 3, kind: input, shape index: {}]   ;;  %s841_s4 = inlined_call_operand.vmem [shape: f32[1,32], index: 4, kind: input, shape index: {}]   ;;  %s842_s5 = inlined_call_operand.hbm [shape: f32[16,32], index: 5, kind: output, shape index: {}]  }
   0x1   :  { %12 = vsyncpa [#allocation3 + $0x1], 0  ;;  %s699_s18 = smov 0   ;;  %s701_s19 = smov 0  }
   0x2   :  { %s703_s20 = smov 0   ;;  %s705_s21 = smov 0  }
   0x3 LB: > { %s720_s22 = sadd.s32 4294967295, %s664_s21   ;;  %s486_s23 = sadd.s32 4294967294, %s664_s21   ;;  %s664_s21 = sphi %s705_s21, %s848_s21   ;;  %s660_s20 = sphi %s703_s20, %s847_s20   ;;  %s656_s19 = sphi %s701_s19, %s846_s19   ;;  %s652_s18 = sphi %s699_s18, %s845_s18  }
   0x4   : > { %s724_s24 = sadd.s32 1, %s664_s21   ;;  %s135_s25 = sadd.s32 1, %s660_s20 }
   0x5   : > { %s132_s26 = ssub.s32 %s664_s21, %s724_s24  ;;  %p145_p0 = scmp.ne.s32.totalorder %s660_s20, %s656_s19 }
   0x6   : > { %p133_p1 = scmp.eq.s32.totalorder %s132_s26, 0  ;;  %p146_p2 = scmp.eq.s32.totalorder %s720_s22, 1 }
   0x7   : > { %p151_p3 = scmp.ne.s32.totalorder %s656_s19, %s652_s18  ;;  %p152_p4 = scmp.eq.s32.totalorder %s486_s23, 1 }
   0x8   : > { %s735_s27 = scalar_select %p133_p1, %s660_s20, %s135_s25  }
   0x9   : > { %p737_p5 = por %p146_p2, %p145_p0  ;;  %p741_p6 = por %p152_p4, %p151_p3 }
   0xa   : > { %p489_p7 = scmp.ge.s32.totalorder %s664_s21, 1  ;;  %p189_p8 = scmp.lt.s32.totalorder %s664_s21, 3 }
   0xc   : > { %p190_p9 = pnand %p489_p7, %p189_p8 }
   0xd   : > { %v590_v0 = vld [vmem:[%s838_s1] sm:$0xff] (!%p190_p9)   ;;  %v666_v1 = vmov (!%p190_p9), 0.0   ;;  %v591_v2 = vld [vmem:[%s838_s1 + $0x8] sm:$0xff] (!%p190_p9)   ;;  %vm667_vm0 = vmmov (!%p190_p9), 0   ;;  %p216_p10 = scmp.lt.s32.totalorder (!%p190_p9), %s720_s22, 1  ;;  %vm246_vm1 = vcmask (!%p190_p9), 261120  }
   0xe   : > { %193 = sbr.rel (%p190_p9) target bundleno = 501 (0x1f5), region = 40  ;;  %521 = vmatprep.subr.bf16.mxu0 (!%p190_p9), %v666_v1  ;;  %529 = vmatprep.subr.bf16.mxu1 (!%p190_p9), %v666_v1  ;;  %v592_v5 = vld [vmem:[%s840_s3] sm:$0xff] (!%p190_p9)   ;;  %v593_v6 = vld [vmem:[%s840_s3 + $0x8] sm:$0xff] (!%p190_p9)   ;;  %v594_v7 = vld [vmem:[%s840_s3 + $0x10] sm:$0xff] (!%p190_p9)   ;;  %s213_s16 = sand.u32 (!%p190_p9), 1, %s656_s19  }
   0xf   : > { %522 = vmatpush3.bf16.msra.mxu0 (!%p190_p9), %v590_v0  ;;  %525 = vmatprep.mubr.msk.bf16.mxu0 (!%p190_p9), %vm667_vm0, %v666_v1  ;;  %v595_v8 = vld [vmem:[%s840_s3 + $0x18] sm:$0xff] (!%p190_p9)   ;;  %v596_v9 = vld [vmem:[%s840_s3 + $0x20] sm:$0xff] (!%p190_p9)   ;;  %v597_v10 = vld [vmem:[%s840_s3 + $0x28] sm:$0xff] (!%p190_p9)   ;;  %s490_s17 = sshll.u32 (!%p190_p9), %s213_s16, 3  ;;  %s506_s26 = sshll.u32 (!%p190_p9), %s720_s22, 7 }
  0x10   : > { %523 = vmatprep.subr.bf16.mxu0 (!%p190_p9), %v666_v1  ;;  %545 = vmatprep.mubr.msk.bf16.mxu1 (!%p190_p9), %vm667_vm0, %v666_v1  ;;  %v598_v11 = vld [vmem:[%s840_s3 + $0x30] sm:$0xff] (!%p190_p9)   ;;  %v599_v12 = vld [vmem:[%s840_s3 + $0x38] sm:$0xff] (!%p190_p9)   ;;  %v492_v13 = vld [vmem:[%s839_s2] ss:$0 sm:$0xff] (!%p190_p9)  ;;  %s215_s30 = scalar_lea.vmem (!%p190_p9), [#allocation2], %s490_s17  ;;  %s668_s11 = smov (!%p190_p9), [#allocation2]  }
  0x11   : > { %530 = vmatpush3.bf16.msra.mxu1 (!%p190_p9), %v592_v5  ;;  %v496_v29 = vld [vmem:[%s841_s4] ss:$0 sm:$0xff] (!%p190_p9)  ;;  %s427_s6 = sshll.u32 (!%p190_p9), %s215_s30, 4  ;;  %s606_s12 = sshll.u32 (!%p190_p9), %s668_s11, 4  ;;  %s796_s6 = int_to_ptr.vmem [resolvable:$true] %s427_s6  ;;  %s607_s12 = int_to_ptr.vmem [resolvable:$false] %s606_s12 }
  0x12   : > { %531 = vmatprep.subr.bf16.mxu1 (!%p190_p9), %v666_v1  ;;  %p609_p0 = scmp.lt.s32.totalorder (!%p190_p9), %s796_s6, %s607_s12 }
  0x13   : > { %524 = vmatpush3.bf16.msra.mxu0 (!%p190_p9), %v591_v2 }
  0x15   : > { %s217_s9 = scalar_select %p216_p10, %s720_s22, 1  ;;  %532 = vmatpush3.bf16.msra.mxu1 %v593_v6 }
  0x16   : > { %533 = vmatprep.subr.bf16.mxu1 %v666_v1  ;;  %s414_s22 = scalar_lea.sflag [#allocation3], %s213_s16 }
  0x17   : > { %s491_s10 = sshll.u32 %s217_s9, 3  ;;  %s794_s9 = scalar_lea.hbm %s842_s5, %s506_s26 }
  0x18   : > { %s219_s13 = scalar_lea.vmem %s837_s0, %s491_s10  ;;  %s602_s10 = scalar_lea.vmem %s796_s6, 128 }
  0x19   : > { %v221_v3 = vld [vmem:[%s219_s13] sm:$0xff]  ;;  %534 = vmatpush3.bf16.msra.mxu1 %v594_v7  ;;  %p603_p11 = scmp.ne.s32.totalorder %s796_s6, %s602_s10  ;;  %s608_s13 = scalar_lea.vmem %s607_s12, 256 }
  0x1a   : > { %v222_v4 = vpack.c.bf16 %v221_v3, %v221_v3  ;;  %535 = vmatprep.subr.bf16.mxu1 %v666_v1  ;;  %p610_p1 = scmp.lt.s32.totalorder %s608_s13, %s602_s10 }
  0x1b   : > { %p604_p12 = pnand %p603_p11, %p737_p5 }
  0x1c   : > { %526 = vmatmul.mubr.msk.bf16.vlgmr.msra.gmra.mrb[0].mxu0 %vm246_vm1, %v222_v4  ;;  %p611_p2 = por %p610_p1, %p609_p0 }
  0x1d   : > { %536 = vmatpush3.bf16.msra.mxu1 %v595_v8  ;;  %p605_p13 = pneg %p604_p12 }
  0x1e   : > { %537 = vmatprep.subr.bf16.mxu1 %v666_v1 }
  0x1f   : > { %p612_p3 = pnand %p611_p2, %p605_p13 }
  0x21   : > { %538 = vmatpush3.bf16.msra.mxu1 %v596_v9 }
  0x22   : > { %539 = vmatprep.subr.bf16.mxu1 %v666_v1 }
  0x25   : > { %540 = vmatpush3.bf16.msra.mxu1 %v597_v10 }
  0x26   : > { %541 = vmatprep.subr.bf16.mxu1 %v666_v1 }
  0x29   : > { %542 = vmatpush3.bf16.msra.mxu1 %v598_v11 }
  0x2a   : > { %543 = vmatprep.subr.bf16.mxu1 %v666_v1 }
  0x2d   : > { %544 = vmatpush3.bf16.msra.mxu1 %v599_v12 }
  0xef   : > { %v284_v14 = vpop.f32.mrb[0].mxu0 }
  0xf0   : > { %v285_v15 = vadd.f32 %v492_v13, %v284_v14  ;;  %v527_v16 = vpop.f32.mrb[1].mxu0 }
  0xf1   : > { %v287_v17 = vpop.f32.mrb[2].mxu0 }
  0xf2   : > { %v290_v18 = vmul.f32 %v285_v15, %v285_v15  ;;  %v528_v19 = vpop.f32.mrb[3].mxu0 }
  0xf4   : > { %v291_v20 = vmul.f32 %v290_v18, %v285_v15 }
  0xf6   : > { %v292_v21 = vmul.f32 0.044715, %v291_v20 }
  0xf8   : > { %v293_v22 = vadd.f32 %v292_v21, %v285_v15 }
  0xfa   : > { %v294_v23 = vmul.f32 0.7978846, %v293_v22 }
  0xfc   : > { %600 = vtanh.f32 %v294_v23 }
 0x106   : > { %v601_v24 = vpop.eup %600 }
 0x107   : > { %v296_v25 = vadd.f32 1.0, %v601_v24 }
 0x109   : > { %v297_v26 = vmul.f32 0.5, %v296_v25 }
 0x10b   : > { %v298_v27 = vmul.f32 %v297_v26, %v285_v15 }
 0x10d   : > { %v299_v28 = vpack.c.bf16 %v298_v27, %v298_v27 }
 0x10f   : > { %546 = vmatmul.mubr.bf16.vlgmr.msra.gmra.mrb[0].mxu1 %v299_v28 }
 0x1e2   : > { %v405_v30 = vpop.f32.mrb[0].mxu1 }
 0x1e3   : > { %v406_v31 = vadd.f32 %v496_v29, %v405_v30  ;;  %v547_v32 = vpop.f32.mrb[1].mxu1 }
 0x1e4   : > { %v408_v33 = vpop.f32.mrb[2].mxu1 }
 0x1e5   : > { %v411_v34 = vadd.f32 %v406_v31, %v221_v3  ;;  %v548_v35 = vpop.f32.mrb[3].mxu1 }
 0x1e7   : > { %412 = vst.msk [vmem:[%s215_s30] sm:$0xff] %vm246_vm1, %v411_v34 }
 0x1e8   : > { %615 = shalt.err (!%p612_p3)
}
 0x1e9   : > { %s616_s14 = scalar_lea.hbm %s794_s9, 128  ;;  %s620_s17 = scalar_lea.hbm %s842_s5, 256 }
 0x1ea   : > { %p617_p4 = scmp.ne.s32.totalorder %s794_s9, %s616_s14  ;;  %p621_p9 = scmp.lt.u32.totalorder %s794_s9, %s842_s5 }
 0x1eb   : > { %p622_p10 = scmp.lt.u32.totalorder %s620_s17, %s616_s14  ;;  %p624_p12 = scmp.lt.u32.totalorder %s616_s14, %s794_s9 }
 0x1ec   : > { %p618_p7 = pnand %p617_p4, %p737_p5 }
 0x1ed   : > { %p623_p11 = por %p622_p10, %p621_p9 }
 0x1ee   : > { %p619_p8 = pneg %p618_p7 }
 0x1ef   : > { %p625_p13 = por %p624_p12, %p623_p11 }
 0x1f1   : > { %p626_p0 = pnand %p625_p13, %p619_p8 }
 0x1f3   : > { %629 = shalt.err (!%p626_p0)
}
 0x1f4   : > { %549 = dma.vmem_to_hbm [thread:$0]  (%p737_p5), %s796_s6, 128, %s794_s9, %s414_s22  }
 0x1f5 PF: > { %p555_p1 = scmp.ge.s32.totalorder %s664_s21, 2  ;;  %s439_s26 = sand.u32 1, %s652_s18  }
 0x1f6   : > { %s440_s30 = scalar_lea.sflag [#allocation3], %s439_s26 }
 0x1f7   : > { %p552_p2 = pnand %p555_p1, %p741_p6 }
 0x1f9   : > { %647 = dma.done.wait (!%p552_p2), %s440_s30, 128  }
 0x1fa   : > { %649 = vsyncadd (!%p552_p2), %s440_s30, 4294967168  ;;  %p15_p3 = scmp.ge.s32.totalorder %s724_s24, 4   ;;  %s845_s18 = smov %s656_s19 }
 0x1fb   : > { %s846_s19 = smov %s660_s20  ;;  %s847_s20 = smov %s735_s27 }
 0x1fc   : > { %s848_s21 = smov %s724_s24  ;;  %17 = sbr.rel (!%p15_p3) target bundleno = 3 (0x3), region = 75 }
 0x203   :  { %445 = vsyncpa [#allocation3], 1 }
 0x204   :  { %447 = vsyncpa [#allocation3 + $0x1], 1 }

</bundles_post_ra>
